<compile_context>
chip_gen: v5e
topology: v5e:2x2
jax: 0.10.0
libtpu: 0.0.40
codegen_flags: <defaults>
</compile_context>

<pallas_src>
import jax
import jax.numpy as jnp
from jax.experimental import pallas as pl
from jax.experimental.pallas import tpu as pltpu

LANE = 128      # lane width: feature dims padded to a multiple of this
SUBLANE = 8     # sublane width: batch tiles aligned to this


def _round_up(n, m):
    return ((n + m - 1) // m) * m


def drug_ae_kernel(x_ref,
                   w1_ref, b1_ref,     # encoder Linear(input  -> hidden)
                   w23_ref, b23_ref,   # fused encoder.Linear2 @ decoder.Linear1
                   w4_ref, b4_ref,     # decoder Linear(hidden -> input)
                   y_ref):
    x = x_ref[...]

    # ----- encoder -----
    h = jnp.dot(x.astype(jnp.bfloat16), w1_ref[...],
                preferred_element_type=jnp.float32) + b1_ref[...]
    h = jnp.maximum(h, 0.0).astype(jnp.bfloat16)     # ReLU(True), kept bf16
    # Dropout(0.5): identity in eval mode.
    # TODO(synk): training-mode dropout (pltpu.prng_seed/prng_random_bits + 1/(1-p) scale) not implemented.

    # ----- encoder Linear2 + decoder Linear1, algebraically fused -----
    # z = h@w2+b2 ; d_pre = z@w3+b3  ==  d_pre = h@(w2@w3) + (b2@w3 + b3)
    d = jnp.dot(h, w23_ref[...],
                preferred_element_type=jnp.float32) + b23_ref[...]
    d = jnp.maximum(d, 0.0).astype(jnp.bfloat16)     # ReLU(True), kept bf16

    # ----- decoder output -----
    y = jnp.dot(d, w4_ref[...],
                preferred_element_type=jnp.float32) + b4_ref[...]
    y_ref[...] = y.astype(y_ref.dtype)


def init_params(key, input_dim, output_dim):
    """Weights pre-transposed to (in, out), zero-padded to 128-lane multiples,
    stored bf16 (fused w2@w3 for the bottleneck); biases f32 shaped (1, out)."""
    if output_dim in (32, 64):
        hidden_dim = 256
    elif output_dim in (128, 256):
        hidden_dim = 512
    else:
        hidden_dim = 1024

    in_p = _round_up(input_dim, LANE)
    hid_p = _round_up(hidden_dim, LANE)
    out_p = _round_up(output_dim, LANE)

    ks = jax.random.split(key, 8)

    def lin_f32(kw, kb, fan_in, fan_out, fan_in_p, fan_out_p):
        w = (jax.random.normal(kw, (fan_in, fan_out), jnp.float32)
             * (1.0 / jnp.sqrt(fan_in)))
        b = jax.random.normal(kb, (fan_out,), jnp.float32) * 0.01
        # Zero padding is exact: padded rows/cols contribute exactly 0 downstream.
        w_p = jnp.zeros((fan_in_p, fan_out_p), jnp.float32).at[:fan_in, :fan_out].set(w)
        b_p = jnp.zeros((1, fan_out_p), jnp.float32).at[0, :fan_out].set(b)
        return w_p, b_p

    w1_f, b1 = lin_f32(ks[0], ks[1], input_dim, hidden_dim, in_p, hid_p)
    w2_f, b2 = lin_f32(ks[2], ks[3], hidden_dim, output_dim, hid_p, out_p)
    w3_f, b3 = lin_f32(ks[4], ks[5], output_dim, hidden_dim, out_p, hid_p)
    w4_f, b4 = lin_f32(ks[6], ks[7], hidden_dim, input_dim, hid_p, in_p)

    # Fuse the linear bottleneck (valid in eval mode: Dropout is identity and
    # there is no nonlinearity between the two Linears).
    w23_f = jnp.dot(w2_f, w3_f)                       # (hid_p, hid_p)
    b23 = jnp.dot(b2, w3_f) + b3                      # (1, hid_p)

    return {"w1": w1_f.astype(jnp.bfloat16), "b1": b1,
            "w23": w23_f.astype(jnp.bfloat16), "b23": b23,
            "w4": w4_f.astype(jnp.bfloat16), "b4": b4,
            "input_dim": input_dim, "hidden_dim": hidden_dim,
            "output_dim": output_dim,
            "in_p": in_p, "hid_p": hid_p, "out_p": out_p}


def _batch_tile(B, batch_tile):
    """Sublane-aligned batch tile, capped so the grid has >=2 steps when possible."""
    B_align = _round_up(B, SUBLANE)
    tb = max(SUBLANE, min(_round_up(batch_tile, SUBLANE), B_align))
    if B_align >= 2 * SUBLANE:
        # Guarantee >= 2 grid steps so ("parallel",) can use both v7x TCs.
        tb = min(tb, _round_up(B_align // 2, SUBLANE))
    B_pad = _round_up(B, tb)
    return tb, B_pad


def drug_ae_forward(x, params, *, batch_tile=2048, out_dtype=jnp.float32):
    """x: (B, input_dim) float32 -> (B, input_dim) out_dtype."""
    B, input_dim = x.shape
    assert input_dim == params["input_dim"]
    in_p, hid_p = params["in_p"], params["hid_p"]

    tb, B_pad = _batch_tile(B, batch_tile)

    # Only materialize a padded copy of x when actually needed (pad pass roughly
    # doubles HBM traffic for x when the kernel is HBM-bound).
    # TODO(synk): handle the ragged last batch tile in-kernel with a masked write
    # instead of padding in the wrapper.
    if B_pad == B and in_p == input_dim:
        x_in = x
    else:
        x_in = jnp.zeros((B_pad, in_p), x.dtype).at[:B, :input_dim].set(x)

    w1, b1 = params["w1"], params["b1"]
    w23, b23 = params["w23"], params["b23"]
    w4, b4 = params["w4"], params["b4"]
    weights = (w1, b1, w23, b23, w4, b4)

    def io_spec():
        return pl.BlockSpec((tb, in_p), lambda i: (i, 0))

    def const_spec(shape):
        # Constant block index -> resident in VMEM across grid steps; request
        # single buffering (double-buffer would be dead VMEM).
        idx = lambda i: (0, 0)
        try:
            return pl.BlockSpec(shape, idx, pipeline_mode=pl.Buffered(1))
        except Exception:
            return pl.BlockSpec(shape, idx)

    out_itemsize = jnp.dtype(out_dtype).itemsize
    weight_bytes = sum(int(a.size) * a.dtype.itemsize for a in weights)
    io_bytes = B_pad * in_p * (x.dtype.itemsize + out_itemsize)
    flops = 2 * B_pad * (in_p * hid_p + hid_p * hid_p + hid_p * in_p)
    cost = pl.CostEstimate(flops=flops, transcendentals=0,
                           bytes_accessed=weight_bytes + io_bytes)

    # VMEM budget: resident weights (single-buffered) + double-buffered x/y
    # tiles + bf16 intermediates + f32 pre-activation temporaries.
    vmem_est = (weight_bytes
                + 2 * tb * in_p * x.dtype.itemsize       # x tile, 2x buffered
                + 2 * tb * in_p * out_itemsize            # y tile, 2x buffered
                + tb * hid_p * (2 + 2 + 4 + 4))           # h/d bf16 + f32 temps
    try:
        vmem_cap = int(pltpu.get_tpu_info().vmem_capacity_bytes)
    except Exception:
        vmem_cap = 64 * 1024 * 1024                       # conservative (v7x per-TC)
    cap = max(vmem_cap - 16 * 1024 * 1024, 32 * 1024 * 1024)
    vmem_limit = int(min(cap, max(2 * vmem_est, 32 * 1024 * 1024)))

    y_p = pl.pallas_call(
        drug_ae_kernel,
        out_shape=jax.ShapeDtypeStruct((B_pad, in_p), out_dtype),
        grid=(B_pad // tb,),
        in_specs=[io_spec(),
                  const_spec(w1.shape), const_spec(b1.shape),
                  const_spec(w23.shape), const_spec(b23.shape),
                  const_spec(w4.shape), const_spec(b4.shape)],
        out_specs=io_spec(),
        compiler_params=pltpu.CompilerParams(
            dimension_semantics=("parallel",),
            vmem_limit_bytes=vmem_limit),
        cost_estimate=cost,
    )(x_in, *weights)

    if B_pad == B and in_p == input_dim:
        return y_p
    return y_p[:B, :input_dim]


def reference_forward(x, params):
    """Pure-JAX reference with numerics matching the kernel
    (bf16 weights/activations, f32 accumulation, fused w2@w3)."""
    in_dim, in_p = params["input_dim"], params["in_p"]
    B = x.shape[0]
    x_p = x if in_p == in_dim else jnp.zeros((B, in_p), x.dtype).at[:, :in_dim].set(x)

    h = jnp.dot(x_p.astype(jnp.bfloat16), params["w1"],
                preferred_element_type=jnp.float32) + params["b1"]
    h = jnp.maximum(h, 0.0).astype(jnp.bfloat16)
    d = jnp.dot(h, params["w23"],
                preferred_element_type=jnp.float32) + params["b23"]
    d = jnp.maximum(d, 0.0).astype(jnp.bfloat16)
    y = jnp.dot(d, params["w4"],
                preferred_element_type=jnp.float32) + params["b4"]
    return y[:, :in_dim]


if __name__ == "__main__":
    INPUT_DIM = 128
    OUTPUT_DIM = 32    # -> hidden_dim = 256; output padded 32 -> 128 lanes

    key = jax.random.PRNGKey(0)
    kx1, kx2, kp = jax.random.split(key, 3)
    params = init_params(kp, INPUT_DIM, OUTPUT_DIM)

    # Test 1: aligned batch -> no wrapper pad copy; tile caps at B/2 so grid=(2,)
    # (exercises resident weights across steps and the megacore-friendly split).
    x1 = jax.random.normal(kx1, (16, INPUT_DIM), jnp.float32)
    y1 = jax.block_until_ready(drug_ae_forward(x1, params))
    assert y1.shape == (16, INPUT_DIM)
    assert jnp.allclose(y1, reference_forward(x1, params), atol=2e-2, rtol=2e-2)

    # Test 2: ragged batch (24 -> padded to 32, grid=(2,)) with explicit tile.
    x2 = jax.random.normal(kx2, (24, INPUT_DIM), jnp.float32)
    y2 = jax.block_until_ready(drug_ae_forward(x2, params, batch_tile=16))
    assert y2.shape == (24, INPUT_DIM)
    assert jnp.allclose(y2, reference_forward(x2, params), atol=2e-2, rtol=2e-2)

    print("KERNEL_OK")
</pallas_src>

<mosaic_0001>
module attributes {stable_mosaic.version = 11 : i64} {
  func.func @drug_ae_kernel(%arg0: i32, %arg1: memref<8x128xf32, #tpu.memory_space<vmem>>, %arg2: memref<128x256xbf16, #tpu.memory_space<vmem>>, %arg3: memref<1x256xf32, #tpu.memory_space<vmem>>, %arg4: memref<256x256xbf16, #tpu.memory_space<vmem>>, %arg5: memref<1x256xf32, #tpu.memory_space<vmem>>, %arg6: memref<256x128xbf16, #tpu.memory_space<vmem>>, %arg7: memref<1x128xf32, #tpu.memory_space<vmem>>, %arg8: memref<8x128xf32, #tpu.memory_space<vmem>>) attributes {dimension_semantics = [#tpu.dimension_semantics<parallel>], iteration_bounds = array<i64: 2>, scalar_prefetch = 0 : i64, scratch_operands = 0 : i64, tpu.core_type = #tpu.core_type<tc>, window_params = [{transform_indices = @transform_0, window_bounds = array<i64: 8, 128>}, {pipeline_mode = #tpu.pipeline_mode<synchronous>, transform_indices = @transform_1, window_bounds = array<i64: 128, 256>}, {pipeline_mode = #tpu.pipeline_mode<synchronous>, transform_indices = @transform_2, window_bounds = array<i64: 1, 256>}, {pipeline_mode = #tpu.pipeline_mode<synchronous>, transform_indices = @transform_3, window_bounds = array<i64: 256, 256>}, {pipeline_mode = #tpu.pipeline_mode<synchronous>, transform_indices = @transform_4, window_bounds = array<i64: 1, 256>}, {pipeline_mode = #tpu.pipeline_mode<synchronous>, transform_indices = @transform_5, window_bounds = array<i64: 256, 128>}, {pipeline_mode = #tpu.pipeline_mode<synchronous>, transform_indices = @transform_6, window_bounds = array<i64: 1, 128>}, {transform_indices = @transform_7, window_bounds = array<i64: 8, 128>}]} {
    %c0 = arith.constant 0 : index
    %c0_0 = arith.constant 0 : index
    %0 = vector.load %arg1[%c0, %c0_0] : memref<8x128xf32, #tpu.memory_space<vmem>>, vector<8x128xf32>
    %1 = arith.truncf %0 : vector<8x128xf32> to vector<8x128xbf16>
    %c0_1 = arith.constant 0 : index
    %c0_2 = arith.constant 0 : index
    %2 = vector.load %arg2[%c0_1, %c0_2] : memref<128x256xbf16, #tpu.memory_space<vmem>>, vector<128x256xbf16>
    %cst = arith.constant dense<0.000000e+00> : vector<8x256xf32>
    %3 = tpu.matmul %1, %2, %cst {dimension_numbers = #tpu.dot_dimension_numbers<[1], [0], [0], [1], [0, 0, 1, 1], [], []>} : vector<8x128xbf16>, vector<128x256xbf16>, vector<8x256xf32> -> vector<8x256xf32>
    %c0_3 = arith.constant 0 : index
    %c0_4 = arith.constant 0 : index
    %4 = vector.load %arg3[%c0_3, %c0_4] : memref<1x256xf32, #tpu.memory_space<vmem>>, vector<1x256xf32>
    %5 = vector.broadcast %4 : vector<1x256xf32> to vector<8x256xf32>
    %6 = arith.addf %3, %5 : vector<8x256xf32>
    %cst_5 = arith.constant 0.000000e+00 : f32
    %7 = vector.broadcast %cst_5 : f32 to vector<8x256xf32>
    %8 = arith.maximumf %6, %7 : vector<8x256xf32>
    %9 = arith.truncf %8 : vector<8x256xf32> to vector<8x256xbf16>
    %c0_6 = arith.constant 0 : index
    %c0_7 = arith.constant 0 : index
    %10 = vector.load %arg4[%c0_6, %c0_7] : memref<256x256xbf16, #tpu.memory_space<vmem>>, vector<256x256xbf16>
    %cst_8 = arith.constant dense<0.000000e+00> : vector<8x256xf32>
    %11 = tpu.matmul %9, %10, %cst_8 {dimension_numbers = #tpu.dot_dimension_numbers<[1], [0], [0], [1], [0, 0, 1, 1], [], []>} : vector<8x256xbf16>, vector<256x256xbf16>, vector<8x256xf32> -> vector<8x256xf32>
    %c0_9 = arith.constant 0 : index
    %c0_10 = arith.constant 0 : index
    %12 = vector.load %arg5[%c0_9, %c0_10] : memref<1x256xf32, #tpu.memory_space<vmem>>, vector<1x256xf32>
    %13 = vector.broadcast %12 : vector<1x256xf32> to vector<8x256xf32>
    %14 = arith.addf %11, %13 : vector<8x256xf32>
    %cst_11 = arith.constant 0.000000e+00 : f32
    %15 = vector.broadcast %cst_11 : f32 to vector<8x256xf32>
    %16 = arith.maximumf %14, %15 : vector<8x256xf32>
    %17 = arith.truncf %16 : vector<8x256xf32> to vector<8x256xbf16>
    %c0_12 = arith.constant 0 : index
    %c0_13 = arith.constant 0 : index
    %18 = vector.load %arg6[%c0_12, %c0_13] : memref<256x128xbf16, #tpu.memory_space<vmem>>, vector<256x128xbf16>
    %cst_14 = arith.constant dense<0.000000e+00> : vector<8x128xf32>
    %19 = tpu.matmul %17, %18, %cst_14 {dimension_numbers = #tpu.dot_dimension_numbers<[1], [0], [0], [1], [0, 0, 1, 1], [], []>} : vector<8x256xbf16>, vector<256x128xbf16>, vector<8x128xf32> -> vector<8x128xf32>
    %c0_15 = arith.constant 0 : index
    %c0_16 = arith.constant 0 : index
    %20 = vector.load %arg7[%c0_15, %c0_16] : memref<1x128xf32, #tpu.memory_space<vmem>>, vector<1x128xf32>
    %21 = vector.broadcast %20 : vector<1x128xf32> to vector<8x128xf32>
    %22 = arith.addf %19, %21 : vector<8x128xf32>
    %c0_17 = arith.constant 0 : index
    %c0_18 = arith.constant 0 : index
    %23 = vector.load %arg8[%c0_17, %c0_18] : memref<8x128xf32, #tpu.memory_space<vmem>>, vector<8x128xf32>
    tpu.vector_store %arg8[%c0_17, %c0_18], %22 {strides = array<i32>} : memref<8x128xf32, #tpu.memory_space<vmem>>, vector<8x128xf32>,
    return
  }
  func.func @transform_0(%arg0: i32) -> (i32, i32) {
    %c0_i32 = arith.constant 0 : i32
    %c0_i32_0 = arith.constant 0 : i32
    return %arg0, %c0_i32 : i32, i32
  }
  func.func @transform_1(%arg0: i32) -> (i32, i32) {
    %c0_i32 = arith.constant 0 : i32
    %c0_i32_0 = arith.constant 0 : i32
    %c0_i32_1 = arith.constant 0 : i32
    return %c0_i32, %c0_i32_0 : i32, i32
  }
  func.func @transform_2(%arg0: i32) -> (i32, i32) {
    %c0_i32 = arith.constant 0 : i32
    %c0_i32_0 = arith.constant 0 : i32
    %c0_i32_1 = arith.constant 0 : i32
    return %c0_i32, %c0_i32_0 : i32, i32
  }
  func.func @transform_3(%arg0: i32) -> (i32, i32) {
    %c0_i32 = arith.constant 0 : i32
    %c0_i32_0 = arith.constant 0 : i32
    %c0_i32_1 = arith.constant 0 : i32
    return %c0_i32, %c0_i32_0 : i32, i32
  }
  func.func @transform_4(%arg0: i32) -> (i32, i32) {
    %c0_i32 = arith.constant 0 : i32
    %c0_i32_0 = arith.constant 0 : i32
    %c0_i32_1 = arith.constant 0 : i32
    return %c0_i32, %c0_i32_0 : i32, i32
  }
  func.func @transform_5(%arg0: i32) -> (i32, i32) {
    %c0_i32 = arith.constant 0 : i32
    %c0_i32_0 = arith.constant 0 : i32
    %c0_i32_1 = arith.constant 0 : i32
    return %c0_i32, %c0_i32_0 : i32, i32
  }
  func.func @transform_6(%arg0: i32) -> (i32, i32) {
    %c0_i32 = arith.constant 0 : i32
    %c0_i32_0 = arith.constant 0 : i32
    %c0_i32_1 = arith.constant 0 : i32
    return %c0_i32, %c0_i32_0 : i32, i32
  }
  func.func @transform_7(%arg0: i32) -> (i32, i32) {
    %c0_i32 = arith.constant 0 : i32
    %c0_i32_0 = arith.constant 0 : i32
    return %arg0, %c0_i32 : i32, i32
  }
}

</mosaic_0001>

<bundles_post_ra>
// kernel: tpu_custom_call.1
= control target key start
LH: loop header
LB: loop body
LE: loop exit
PB: predicated region body
PF: predicated region fallthrough
CT: control target
= control target key end

     0   :  { %s1917_s0 = inlined_call_operand.hbm [shape: f32[16,128], index: 0, kind: input, shape index: {}]   ;;  %s1918_s1 = inlined_call_operand.hbm [shape: bf16[128,256], index: 1, kind: input, shape index: {}]   ;;  %s1919_s2 = inlined_call_operand.hbm [shape: f32[1,256], index: 2, kind: input, shape index: {}]   ;;  %s1920_s3 = inlined_call_operand.hbm [shape: bf16[256,256], index: 3, kind: input, shape index: {}]   ;;  %s1921_s4 = inlined_call_operand.vmem [shape: f32[1,256], index: 4, kind: input, shape index: {}]   ;;  %s1922_s5 = inlined_call_operand.hbm [shape: bf16[256,128], index: 5, kind: input, shape index: {}]   ;;  %s1923_s6 = inlined_call_operand.vmem [shape: f32[1,128], index: 6, kind: input, shape index: {}]   ;;  %s1924_s7 = inlined_call_operand.hbm [shape: f32[16,128], index: 7, kind: output, shape index: {}]  }
   0x1   :  { %1925 = sst [smem:[#allocation16_spill]] %s1918_s1 }
   0x2   :  { %1926 = sst [smem:[#allocation17_spill]] %s1919_s2 }
   0x3   :  { %12 = vsyncpa [#allocation3], 0 }
   0x4   :  { %14 = vsyncpa [#allocation3 + $0x1], 0 }
   0x5   :  { %15 = vsyncpa [#allocation6], 0 }
   0x6   :  { %16 = vsyncpa [#allocation9], 0 }
   0x7   :  { %17 = vsyncpa [#allocation4], 0 }
   0x8   :  { %19 = vsyncpa [#allocation4 + $0x1], 0  ;;  %s1737_s24 = smov 0   ;;  %s1739_s25 = smov 0  }
   0x9   :  { %s1741_s26 = smov 0   ;;  %s1743_s27 = smov 0  }
   0xa LB: > { %s1927_s1 = sld [smem:[#allocation16_spill]]  ;;  %s1761_s8 = sadd.s32 4294967295, %s1687_s27   ;;  %s1687_s27 = sphi %s1743_s27, %s1940_s27   ;;  %s1683_s26 = sphi %s1741_s26, %s1939_s26   ;;  %s1679_s25 = sphi %s1739_s25, %s1938_s25   ;;  %s1675_s24 = sphi %s1737_s24, %s1937_s24  }
   0xb   : > { %p1032_p0 = scmp.ge.s32.totalorder %s1687_s27, 1  ;;  %p46_p1 = scmp.eq.s32.totalorder %s1761_s8, 0 }
   0xc   : > { %p208_p2 = scmp.lt.s32.totalorder %s1687_s27, 3  ;;  %s1689_s10 = smov [#allocation5]  }
   0xd   : > { %s221_s11 = sshll.u32 %s1689_s10, 4  ;;  %s245_s14 = sshll.u32 %s1920_s3, 4  ;;  %s222_s11 = int_to_ptr.vmem [resolvable:$true] %s221_s11  ;;  %s246_s14 = int_to_ptr.hbm [resolvable:$true] %s245_s14 }
   0xe   : > { %p1766_p3 = pnand %p1032_p0, %p208_p2  ;;  %s1930_s2 = sld [smem:[#allocation17_spill]] }
   0xf   : > { %s1690_s19 = smov [#allocation8]   ;;  %s1691_s21 = smov 128  }
  0x10   : > { %s219_s30 = sshll.u32 %s1927_s1, 4  ;;  %p1391_p4 = pneg %p1766_p3  ;;  %s220_s30 = int_to_ptr.hbm [resolvable:$true] %s219_s30 }
  0x11   : > { %s247_s20 = sshll.u32 %s1690_s19, 4  ;;  %s1692_s22 = smov 8   ;;  %s248_s20 = int_to_ptr.vmem [resolvable:$true] %s247_s20 }
  0x12   : > { %p1778_p6 = pnand %p1391_p4, %p46_p1  ;;  %s262_s29 = sshll.u32 %s1922_s5, 4  ;;  %s263_s29 = int_to_ptr.hbm [resolvable:$true] %s262_s29 }
  0x13   : > { %s1693_s10 = smov [#allocation7]   ;;  %s1695_s13 = smov 64  }
  0x14   : > { %s234_s18 = sshll.u32 %s1930_s2, 4  ;;  %s236_s12 = sshll.u32 %s1693_s10, 4  ;;  %s235_s18 = int_to_ptr.hbm [resolvable:$true] %s234_s18  ;;  %s237_s12 = int_to_ptr.vmem [resolvable:$true] %s236_s12 }
  0x15   : > { %1394 = dma.hbm_to_vmem [thread:$0]  (!%p1778_p6), %s220_s30, 2048, %s222_s11, [#allocation6], %s1691_s21, %s1691_s21, %s1692_s22  }
  0x16   : > { %1400 = dma.hbm_to_vmem [thread:$0]  (!%p1778_p6), %s246_s14, 4096, %s248_s20, [#allocation9], %s1691_s21, %s1691_s21, %s1692_s22  }
  0x17   : > { %1397 = dma.hbm_to_vmem [thread:$0]  (!%p1778_p6), %s235_s18, 32, %s237_s12, [#allocation6]  }
  0x18   : > { %s1694_s30 = smov [#allocation10]   ;;  %s1696_s14 = smov 4  }
  0x19   : > { %s264_s11 = sshll.u32 %s1694_s30, 4  ;;  %s1031_s16 = sadd.s32 4294967294, %s1687_s27   ;;  %s265_s11 = int_to_ptr.vmem [resolvable:$true] %s264_s11 }
  0x1a   : > { %1403 = dma.hbm_to_vmem [thread:$0]  (!%p1778_p6), %s263_s29, 2048, %s265_s11, [#allocation9], %s1695_s13, %s1695_s13, %s1696_s14  }
  0x1b   : > { %s1798_s17 = sadd.s32 1, %s1687_s27   ;;  %s32_s20 = sadd.s32 1, %s1683_s26 }
  0x1c   : > { %s29_s19 = ssub.s32 %s1687_s27, %s1798_s17  ;;  %p39_p8 = scmp.ne.s32.totalorder %s1683_s26, %s1679_s25 }
  0x1d   : > { %p30_p7 = scmp.eq.s32.totalorder %s29_s19, 0  ;;  %p40_p9 = scmp.eq.s32.totalorder %s1687_s27, 0 }
  0x1e   : > { %p45_p10 = scmp.ne.s32.totalorder %s1679_s25, %s1675_s24  ;;  %p195_p13 = scmp.eq.s32.totalorder %s1761_s8, 1 }
  0x1f   : > { %s1809_s18 = scalar_select %p30_p7, %s1683_s26, %s32_s20  }
  0x20   : > { %p1811_p11 = por %p40_p9, %p39_p8  ;;  %p1817_p12 = por %p46_p1, %p45_p10 }
  0x21   : > { %p201_p0 = scmp.eq.s32.totalorder %s1031_s16, 1  ;;  %p1416_p2 = scmp.lt.s32.totalorder %s1687_s27, 2 }
  0x22   : > { %s281_s22 = sand.u32 1, %s1683_s26   ;;  %p1824_p4 = por %p195_p13, %p39_p8 }
  0x23   : > { %p1828_p6 = por %p201_p0, %p45_p10  ;;  %s1038_s29 = sshll.u32 %s281_s22, 3 }
  0x24   : > { %s1039_s10 = sshll.u32 %s1687_s27, 3  ;;  %s285_s13 = scalar_lea.vmem [#allocation2], %s1038_s29 }
  0x25   : > { %s289_s11 = scalar_lea.hbm %s1917_s0, %s1039_s10  ;;  %s293_s14 = sshll.u32 %s285_s13, 4  ;;  %s294_s14 = int_to_ptr.vmem [resolvable:$true] %s293_s14 }
  0x26   : > { %s291_s19 = sshll.u32 %s289_s11, 4  ;;  %p1838_p7 = pnand %p1416_p2, %p1811_p11  ;;  %s292_s19 = int_to_ptr.hbm [resolvable:$true] %s291_s19 }
  0x27   : > { %s282_s20 = scalar_lea.sflag [#allocation3], %s281_s22  ;;  %s1583_s1 = sshra.s32 %s292_s19, 4  ;;  %s1584_s1 = int_to_ptr.hbm [resolvable:$true] %s1583_s1 }
  0x28   : > { %s1585_s2 = scalar_lea.hbm %s1584_s1, 8  ;;  %p1587_p9 = pneg %p1838_p7 }
  0x29   : > { %p1586_p8 = scmp.ne.s32.totalorder %s1584_s1, %s1585_s2  ;;  %s1590_s12 = scalar_lea.hbm %s1917_s0, 16 }
  0x2a   : > { %p1591_p11 = scmp.lt.s32.totalorder %s1584_s1, %s1917_s0  ;;  %p1592_p0 = scmp.lt.s32.totalorder %s1590_s12, %s1585_s2 }
  0x2b   : > { %p1588_p10 = pnand %p1587_p9, %p1586_p8 }
  0x2c   : > { %p1593_p2 = por %p1592_p0, %p1591_p11 }
  0x2d   : > { %p1589_p13 = pneg %p1588_p10 }
  0x2f   : > { %p1594_p5 = pnand %p1593_p2, %p1589_p13 }
  0x31   : > { %1597 = shalt.err (!%p1594_p5)
}
  0x32   : > { %1407 = dma.hbm_to_vmem [thread:$0]  (!%p1838_p7), %s292_s19, 128, %s294_s14, %s282_s20  }
  0x33   : > { %302 = sbr.rel (%p1766_p3) target bundleno = 507 (0x1fb), region = 48  ;;  %s1855_s22 = sand.u32 (!%p1766_p3), 1, %s1679_s25  }
  0x34   : > { %s1041_s11 = sshll.u32 (!%p1766_p3), %s1855_s22, 3  ;;  %s305_s13 = scalar_lea.sflag (!%p1766_p3), [#allocation3], %s1855_s22 }
  0x35   : > { %s1861_s1 = scalar_lea.vmem (!%p1766_p3), [#allocation2], %s1041_s11 }
  0x38   : > { %1658 = dma.done.wait (%p1817_p12), %s305_s13, 128  }
  0x39   : > { %1660 = vsyncadd (%p1817_p12), %s305_s13, 4294967168 }
  0x3a   : > { %1662 = dma.done.wait (%p46_p1), [#allocation6], 2080  }
  0x3b   : > { %1664 = vsyncadd (%p46_p1), [#allocation6], 4294965216 }
  0x3c   : > { %1666 = dma.done.wait (%p46_p1), [#allocation9], 6144  }
  0x3d   : > { %1668 = vsyncadd (%p46_p1), [#allocation9], 4294961152  ;;  %v1105_v0 = vld [vmem:[#allocation5 + $0x70] sm:$0xf]  ;;  %v1322_v1 = vld [vmem:[#allocation5 + $0x74] sm:$0xf0] }
  0x3e   : > { %v1321_v2 = vld [vmem:[#allocation5 + $0x74] sm:$0xf]  ;;  %v1106_v3 = vor.u32 %v1322_v1, %v1105_v0  ;;  %v1107_v4 = vld [vmem:[#allocation5 + $0x78] sm:$0xf0]  ;;  %v1097_v5 = vld [vmem:[#allocation5 + $0x60] sm:$0xf] }
  0x3f   : > { %v1320_v6 = vld [vmem:[#allocation5 + $0x64] sm:$0xf0]  ;;  %v1110_v7 = vor.u32 %v1321_v2, %v1107_v4  ;;  %v1319_v8 = vld [vmem:[#allocation5 + $0x64] sm:$0xf]  ;;  %v1099_v9 = vld [vmem:[#allocation5 + $0x68] sm:$0xf0] }
  0x40   : > { %464 = vmatpush.bf16.msra.mxu0 %v1106_v3  ;;  %v1098_v10 = vor.u32 %v1320_v6, %v1097_v5  ;;  %v1102_v11 = vor.u32 %v1319_v8, %v1099_v9  ;;  %v1089_v12 = vld [vmem:[#allocation5 + $0x50] sm:$0xf]  ;;  %v1318_v13 = vld [vmem:[#allocation5 + $0x54] sm:$0xf0]  ;;  %v1317_v14 = vld [vmem:[#allocation5 + $0x54] sm:$0xf] }
  0x41   : > { %477 = vmatpush.bf16.msra.mxu1 %v1110_v7  ;;  %v1091_v15 = vld [vmem:[#allocation5 + $0x58] sm:$0xf0]  ;;  %v1090_v16 = vor.u32 %v1318_v13, %v1089_v12  ;;  %v1081_v18 = vld [vmem:[#allocation5 + $0x40] sm:$0xf]  ;;  %v1316_v19 = vld [vmem:[#allocation5 + $0x44] sm:$0xf0] }
  0x42   : > { %v1094_v17 = vor.u32 %v1317_v14, %v1091_v15  ;;  %v1315_v20 = vld [vmem:[#allocation5 + $0x44] sm:$0xf]  ;;  %v1083_v21 = vld [vmem:[#allocation5 + $0x48] sm:$0xf0]  ;;  %v1082_v22 = vor.u32 %v1316_v19, %v1081_v18  ;;  %v1169_v23 = vld [vmem:[#allocation8 + $0x70] sm:$0xf] }
  0x43   : > { %v1338_v24 = vld [vmem:[#allocation8 + $0x74] sm:$0xf0]  ;;  %v1233_v25 = vld [vmem:[#allocation8 + $0xf0] sm:$0xf]  ;;  %v1086_v26 = vor.u32 %v1315_v20, %v1083_v21  ;;  %v1161_v34 = vld [vmem:[#allocation8 + $0x60] sm:$0xf] }
  0x44   : > { %465 = vmatpush.bf16.msra.mxu0 %v1098_v10  ;;  %v1073_v27 = vld [vmem:[#allocation5 + $0x30] sm:$0xf]  ;;  %v1314_v28 = vld [vmem:[#allocation5 + $0x34] sm:$0xf0]  ;;  %v1170_v29 = vor.u32 %v1338_v24, %v1169_v23  ;;  %v1313_v31 = vld [vmem:[#allocation5 + $0x34] sm:$0xf] }
  0x45   : > { %478 = vmatpush.bf16.msra.mxu1 %v1102_v11  ;;  %v1354_v30 = vld [vmem:[#allocation8 + $0xf4] sm:$0xf0]  ;;  %v1336_v35 = vld [vmem:[#allocation8 + $0x64] sm:$0xf0]  ;;  %v1225_v36 = vld [vmem:[#allocation8 + $0xe0] sm:$0xf]  ;;  %v1074_v38 = vor.u32 %v1314_v28, %v1073_v27 }
  0x46   : > { %v1075_v32 = vld [vmem:[#allocation5 + $0x38] sm:$0xf0]  ;;  %v1234_v33 = vor.u32 %v1354_v30, %v1233_v25  ;;  %692 = vmatpush.bf16.msra.mxu2 %v1170_v29  ;;  %v1352_v37 = vld [vmem:[#allocation8 + $0xe4] sm:$0xf0]  ;;  %v1065_v39 = vld [vmem:[#allocation5 + $0x20] sm:$0xf]  ;;  %v1162_v41 = vor.u32 %v1336_v35, %v1161_v34 }
  0x47   : > { %v1312_v40 = vld [vmem:[#allocation5 + $0x24] sm:$0xf0]  ;;  %v1226_v42 = vor.u32 %v1352_v37, %v1225_v36  ;;  %v1078_v43 = vor.u32 %v1313_v31, %v1075_v32  ;;  %v1311_v44 = vld [vmem:[#allocation5 + $0x24] sm:$0xf]  ;;  %v1153_v45 = vld [vmem:[#allocation8 + $0x50] sm:$0xf] }
  0x48   : > { %466 = vmatpush.bf16.msra.mxu0 %v1090_v16  ;;  %705 = vmatpush.bf16.msra.mxu3 %v1234_v33  ;;  %v1334_v46 = vld [vmem:[#allocation8 + $0x54] sm:$0xf0]  ;;  %v1067_v47 = vld [vmem:[#allocation5 + $0x28] sm:$0xf0]  ;;  %v1217_v48 = vld [vmem:[#allocation8 + $0xd0] sm:$0xf]  ;;  %v1066_v51 = vor.u32 %v1312_v40, %v1065_v39 }
  0x49   : > { %479 = vmatpush.bf16.msra.mxu1 %v1094_v17  ;;  %v1350_v49 = vld [vmem:[#allocation8 + $0xd4] sm:$0xf0]  ;;  %v1154_v50 = vor.u32 %v1334_v46, %v1153_v45  ;;  %v1057_v52 = vld [vmem:[#allocation5 + $0x10] sm:$0xf]  ;;  %v1145_v54 = vld [vmem:[#allocation8 + $0x40] sm:$0xf]  ;;  %v1070_v56 = vor.u32 %v1311_v44, %v1067_v47 }
  0x4a   : > { %693 = vmatpush.bf16.msra.mxu2 %v1162_v41  ;;  %v1218_v53 = vor.u32 %v1350_v49, %v1217_v48  ;;  %v1332_v55 = vld [vmem:[#allocation8 + $0x44] sm:$0xf0]  ;;  %v1310_v57 = vld [vmem:[#allocation5 + $0x14] sm:$0xf0]  ;;  %v1209_v58 = vld [vmem:[#allocation8 + $0xc0] sm:$0xf] }
  0x4b   : > { %v1348_v59 = vld [vmem:[#allocation8 + $0xc4] sm:$0xf0]  ;;  %v1309_v60 = vld [vmem:[#allocation5 + $0x14] sm:$0xf]  ;;  %v1059_v61 = vld [vmem:[#allocation5 + $0x18] sm:$0xf0]  ;;  %v1146_v63 = vor.u32 %v1332_v55, %v1145_v54  ;;  %v1058_v0 = vor.u32 %v1310_v57, %v1057_v52 }
  0x4c   : > { %467 = vmatpush.bf16.msra.mxu0 %v1082_v22  ;;  %706 = vmatpush.bf16.msra.mxu3 %v1226_v42  ;;  %v1049_v62 = vld [vmem:[#allocation5] sm:$0xf]  ;;  %v1308_v1 = vld [vmem:[#allocation5 + $0x4] sm:$0xf0]  ;;  %v1210_v2 = vor.u32 %v1348_v59, %v1209_v58  ;;  %v1137_v3 = vld [vmem:[#allocation8 + $0x30] sm:$0xf]  ;;  %v1062_v5 = vor.u32 %v1309_v60, %v1059_v61 }
  0x4d   : > { %480 = vmatpush.bf16.msra.mxu1 %v1086_v26  ;;  %v1330_v4 = vld [vmem:[#allocation8 + $0x34] sm:$0xf0]  ;;  %v1307_v6 = vld [vmem:[#allocation5 + $0x4] sm:$0xf]  ;;  %v1201_v7 = vld [vmem:[#allocation8 + $0xb0] sm:$0xf]  ;;  %v1050_v16 = vor.u32 %v1308_v1, %v1049_v62 }
  0x4e   : > { %694 = vmatpush.bf16.msra.mxu2 %v1154_v50  ;;  %v1346_v8 = vld [vmem:[#allocation8 + $0xb4] sm:$0xf0]  ;;  %v1051_v9 = vld [vmem:[#allocation5 + $0x8] sm:$0xf0]  ;;  %v1337_v10 = vld [vmem:[#allocation8 + $0x74] sm:$0xf]  ;;  %v1138_v15 = vor.u32 %v1330_v4, %v1137_v3 }
  0x4f   : > { %v1171_v11 = vld [vmem:[#allocation8 + $0x78] sm:$0xf0]  ;;  %v1353_v13 = vld [vmem:[#allocation8 + $0xf4] sm:$0xf]  ;;  %v1202_v17 = vor.u32 %v1346_v8, %v1201_v7  ;;  %v1129_v18 = vld [vmem:[#allocation8 + $0x20] sm:$0xf]  ;;  %v1054_v20 = vor.u32 %v1307_v6, %v1051_v9 }
  0x50   : > { %468 = vmatpush.bf16.msra.mxu0 %v1074_v38  ;;  %707 = vmatpush.bf16.msra.mxu3 %v1218_v53  ;;  %v360_v12 = vld [vmem:[%s1861_s1] sm:$0xff]  ;;  %v1328_v19 = vld [vmem:[#allocation8 + $0x24] sm:$0xf0]  ;;  %v1174_v21 = vor.u32 %v1337_v10, %v1171_v11  ;;  %v1193_v22 = vld [vmem:[#allocation8 + $0xa0] sm:$0xf]  ;;  %s1304_s15 = sshll.u32 %s1761_s8, 3 }
  0x51   : > { %481 = vmatpush.bf16.msra.mxu1 %v1078_v43  ;;  %v1235_v14 = vld [vmem:[#allocation8 + $0xf8] sm:$0xf0]  ;;  %v1344_v23 = vld [vmem:[#allocation8 + $0xa4] sm:$0xf0]  ;;  %v1335_v25 = vld [vmem:[#allocation8 + $0x64] sm:$0xf]  ;;  %v361_v27 = vpack.c.bf16 %v360_v12, %v360_v12  ;;  %v1130_v30 = vor.u32 %v1328_v19, %v1129_v18  ;;  %s918_s29 = scalar_lea.hbm %s1924_s7, %s1304_s15 }
  0x52   : > { %695 = vmatpush.bf16.msra.mxu2 %v1146_v63  ;;  %v1238_v24 = vor.u32 %v1353_v13, %v1235_v14  ;;  %v1163_v26 = vld [vmem:[#allocation8 + $0x68] sm:$0xf0]  ;;  %v1351_v28 = vld [vmem:[#allocation8 + $0xe4] sm:$0xf]  ;;  %v1194_v31 = vor.u32 %v1344_v23, %v1193_v22  ;;  %v1333_v34 = vld [vmem:[#allocation8 + $0x54] sm:$0xf] }
  0x53   : > { %v1227_v29 = vld [vmem:[#allocation8 + $0xe8] sm:$0xf0]  ;;  %v1166_v32 = vor.u32 %v1335_v25, %v1163_v26  ;;  %v1155_v35 = vld [vmem:[#allocation8 + $0x58] sm:$0xf0]  ;;  %v1349_v36 = vld [vmem:[#allocation8 + $0xd4] sm:$0xf] }
  0x54   : > { %469 = vmatpush.bf16.msra.mxu0 %v1066_v51  ;;  %708 = vmatpush.bf16.msra.mxu3 %v1210_v2  ;;  %v1230_v33 = vor.u32 %v1351_v28, %v1227_v29  ;;  %v1219_v37 = vld [vmem:[#allocation8 + $0xd8] sm:$0xf0]  ;;  %v1158_v38 = vor.u32 %v1333_v34, %v1155_v35  ;;  %v1331_v40 = vld [vmem:[#allocation8 + $0x44] sm:$0xf]  ;;  %v1147_v41 = vld [vmem:[#allocation8 + $0x48] sm:$0xf0] }
  0x55   : > { %482 = vmatpush.bf16.msra.mxu1 %v1070_v56  ;;  %v1222_v39 = vor.u32 %v1349_v36, %v1219_v37  ;;  %v1347_v42 = vld [vmem:[#allocation8 + $0xc4] sm:$0xf]  ;;  %v1211_v43 = vld [vmem:[#allocation8 + $0xc8] sm:$0xf0]  ;;  %v1150_v44 = vor.u32 %v1331_v40, %v1147_v41  ;;  %v1329_v46 = vld [vmem:[#allocation8 + $0x34] sm:$0xf] }
  0x56   : > { %696 = vmatpush.bf16.msra.mxu2 %v1138_v15  ;;  %v1214_v45 = vor.u32 %v1347_v42, %v1211_v43  ;;  %v1139_v47 = vld [vmem:[#allocation8 + $0x38] sm:$0xf0]  ;;  %v1345_v48 = vld [vmem:[#allocation8 + $0xb4] sm:$0xf]  ;;  %v1327_v52 = vld [vmem:[#allocation8 + $0x24] sm:$0xf] }
  0x57   : > { %v1203_v49 = vld [vmem:[#allocation8 + $0xb8] sm:$0xf0]  ;;  %v1142_v50 = vor.u32 %v1329_v46, %v1139_v47  ;;  %v1131_v53 = vld [vmem:[#allocation8 + $0x28] sm:$0xf0]  ;;  %v1343_v54 = vld [vmem:[#allocation8 + $0xa4] sm:$0xf] }
  0x58   : > { %470 = vmatpush.bf16.msra.mxu0 %v1058_v0  ;;  %709 = vmatpush.bf16.msra.mxu3 %v1202_v17  ;;  %v1206_v51 = vor.u32 %v1345_v48, %v1203_v49  ;;  %v1195_v55 = vld [vmem:[#allocation8 + $0xa8] sm:$0xf0]  ;;  %v1134_v56 = vor.u32 %v1327_v52, %v1131_v53  ;;  %v1121_v58 = vld [vmem:[#allocation8 + $0x10] sm:$0xf]  ;;  %v1326_v59 = vld [vmem:[#allocation8 + $0x14] sm:$0xf0] }
  0x59   : > { %483 = vmatpush.bf16.msra.mxu1 %v1062_v5  ;;  %v1198_v57 = vor.u32 %v1343_v54, %v1195_v55  ;;  %v1185_v60 = vld [vmem:[#allocation8 + $0x90] sm:$0xf]  ;;  %v1122_v61 = vor.u32 %v1326_v59, %v1121_v58  ;;  %v1342_v62 = vld [vmem:[#allocation8 + $0x94] sm:$0xf0]  ;;  %v1325_v63 = vld [vmem:[#allocation8 + $0x14] sm:$0xf] }
  0x5a   : > { %697 = vmatpush.bf16.msra.mxu2 %v1130_v30  ;;  %v1123_v0 = vld [vmem:[#allocation8 + $0x18] sm:$0xf0]  ;;  %v1186_v1 = vor.u32 %v1342_v62, %v1185_v60  ;;  %v1341_v3 = vld [vmem:[#allocation8 + $0x94] sm:$0xf]  ;;  %v1113_v6 = vld [vmem:[#allocation8] sm:$0xf] }
  0x5b   : > { %v1126_v2 = vor.u32 %v1325_v63, %v1123_v0  ;;  %v1187_v4 = vld [vmem:[#allocation8 + $0x98] sm:$0xf0]  ;;  %v1324_v7 = vld [vmem:[#allocation8 + $0x4] sm:$0xf0]  ;;  %v1177_v8 = vld [vmem:[#allocation8 + $0x80] sm:$0xf] }
  0x5c   : > { %471 = vmatpush.bf16.msra.mxu0 %v1050_v16  ;;  %710 = vmatpush.bf16.msra.mxu3 %v1194_v31  ;;  %v1190_v5 = vor.u32 %v1341_v3, %v1187_v4  ;;  %v1114_v9 = vor.u32 %v1324_v7, %v1113_v6  ;;  %v1340_v10 = vld [vmem:[#allocation8 + $0x84] sm:$0xf0]  ;;  %v1323_v11 = vld [vmem:[#allocation8 + $0x4] sm:$0xf]  ;;  %v1115_v12 = vld [vmem:[#allocation8 + $0x8] sm:$0xf0] }
  0x5d   : > { %484 = vmatpush.bf16.msra.mxu1 %v1054_v20  ;;  %v1178_v13 = vor.u32 %v1340_v10, %v1177_v8  ;;  %v1118_v14 = vor.u32 %v1323_v11, %v1115_v12  ;;  %v1339_v15 = vld [vmem:[#allocation8 + $0x84] sm:$0xf]  ;;  %v1179_v16 = vld [vmem:[#allocation8 + $0x88] sm:$0xf0]  ;;  %v1370_v18 = vld [vmem:[#allocation10 + $0x78] sm:$0xff]  ;;  %s359_s10 = scalar_lea.vmem [#allocation11], %s1041_s11 }
  0x5e   : > { %698 = vmatpush.bf16.msra.mxu2 %v1122_v61  ;;  %v1182_v17 = vor.u32 %v1339_v15, %v1179_v16  ;;  %v1362_v19 = vld [vmem:[#allocation10 + $0x38] sm:$0xff]  ;;  %v1369_v20 = vld [vmem:[#allocation10 + $0x70] sm:$0xff]  ;;  %v1368_v22 = vld [vmem:[#allocation10 + $0x68] sm:$0xff]  ;;  %s920_s12 = sshll.u32 %s359_s10, 4  ;;  %s922_s30 = sshll.u32 %s918_s29, 4  ;;  %s921_s12 = int_to_ptr.vmem [resolvable:$true] %s920_s12  ;;  %s923_s30 = int_to_ptr.hbm [resolvable:$true] %s922_s30 }
  0x5f   : > { %472 = vmatmul.bf16.vlgmr.msra.gmra.mxu0 %v361_v27  ;;  %v1360_v23 = vld [vmem:[#allocation10 + $0x28] sm:$0xff]  ;;  %v1359_v25 = vld [vmem:[#allocation10 + $0x20] sm:$0xff]  ;;  %v1366_v26 = vld [vmem:[#allocation10 + $0x58] sm:$0xff]  ;;  %s908_s8 = scalar_lea.sflag [#allocation4], %s1855_s22  ;;  %s1627_s21 = sshra.s32 %s923_s30, 4  ;;  %s1628_s21 = int_to_ptr.hbm [resolvable:$true] %s1627_s21 }
  0x60   : > { %718 = vmatpush.bf16.msrb.mxu0 %v1174_v21  ;;  %485 = vmatmul.bf16.vlgmr.msra.gmra.mxu1 %v361_v27  ;;  %v1361_v21 = vld [vmem:[#allocation10 + $0x30] sm:$0xff]  ;;  %v378_v27 = vld [vmem:[#allocation7] sm:$0x3]  ;;  %v1364_v42 = vld [vmem:[#allocation10 + $0x48] sm:$0xff]  ;;  %s1629_s13 = scalar_lea.hbm %s1628_s21, 8  ;;  %s1633_s11 = scalar_lea.hbm %s1924_s7, 16 }
  0x61   : > { %731 = vmatpush.bf16.msrb.mxu1 %v1238_v24  ;;  %711 = vmatpush.bf16.msra.mxu3 %v1186_v1  ;;  %v1367_v24 = vld [vmem:[#allocation10 + $0x60] sm:$0xff]  ;;  %v1365_v28 = vld [vmem:[#allocation10 + $0x50] sm:$0xff]  ;;  %v380_v29 = vperm.slane %v378_v27, 0  ;;  %v381_v30 = vperm.slane %v378_v27, 1  ;;  %v1358_v41 = vld [vmem:[#allocation10 + $0x18] sm:$0xff]  ;;  %p1630_p1 = scmp.ne.s32.totalorder %s1628_s21, %s1629_s13  ;;  %p1634_p12 = scmp.lt.s32.totalorder %s1628_s21, %s1924_s7 }
  0x62   : > { %699 = vmatpush.bf16.msra.mxu2 %v1114_v9  ;;  %v1357_v43 = vld [vmem:[#allocation10 + $0x10] sm:$0xff]  ;;  %v1355_v46 = vld [vmem:[#allocation10] sm:$0xff]  ;;  %v526_v47 = vld [vmem:[%s1921_s4] sm:$0x3]  ;;  %p1635_p7 = scmp.lt.s32.totalorder %s1633_s11, %s1629_s13 }
  0x63   : > { %v529_v48 = vperm.slane %v526_v47, 1  ;;  %v528_v53 = vperm.slane %v526_v47, 0  ;;  %v1462_v3 = vld [vmem:[%s1923_s6] ss:$0 sm:$0xff]  ;;  %p1631_p3 = pnand %p1630_p1, %p1824_p4 }
  0x64   : > { %719 = vmatpush.bf16.msrb.mxu0 %v1166_v32  ;;  %p1636_p8 = por %p1635_p7, %p1634_p12 }
  0x65   : > { %732 = vmatpush.bf16.msrb.mxu1 %v1230_v33  ;;  %712 = vmatpush.bf16.msra.mxu3 %v1178_v13  ;;  %p1632_p5 = pneg %p1631_p3 }
  0x66   : > { %880 = vmatpush.bf16.msrb.mxu2 %v1362_v19 }
  0x67   : > { %p1637_p9 = pnand %p1636_p8, %p1632_p5 }
  0x68   : > { %720 = vmatpush.bf16.msrb.mxu0 %v1158_v38 }
  0x69   : > { %733 = vmatpush.bf16.msrb.mxu1 %v1222_v39  ;;  %893 = vmatpush.bf16.msrb.mxu3 %v1370_v18 }
  0x6a   : > { %881 = vmatpush.bf16.msrb.mxu2 %v1361_v21 }
  0x6c   : > { %721 = vmatpush.bf16.msrb.mxu0 %v1150_v44  ;;  %v1363_v44 = vld [vmem:[#allocation10 + $0x40] sm:$0xff] }
  0x6d   : > { %734 = vmatpush.bf16.msrb.mxu1 %v1214_v45  ;;  %894 = vmatpush.bf16.msrb.mxu3 %v1369_v20  ;;  %v1356_v45 = vld [vmem:[#allocation10 + $0x8] sm:$0xff] }
  0x6e   : > { %882 = vmatpush.bf16.msrb.mxu2 %v1360_v23 }
  0x70   : > { %722 = vmatpush.bf16.msrb.mxu0 %v1142_v50 }
  0x71   : > { %735 = vmatpush.bf16.msrb.mxu1 %v1206_v51  ;;  %895 = vmatpush.bf16.msrb.mxu3 %v1368_v22 }
  0x72   : > { %883 = vmatpush.bf16.msrb.mxu2 %v1359_v25 }
  0x74   : > { %723 = vmatpush.bf16.msrb.mxu0 %v1134_v56 }
  0x75   : > { %736 = vmatpush.bf16.msrb.mxu1 %v1198_v57  ;;  %896 = vmatpush.bf16.msrb.mxu3 %v1367_v24 }
  0x76   : > { %884 = vmatpush.bf16.msrb.mxu2 %v1358_v41 }
  0x78   : > { %724 = vmatpush.bf16.msrb.mxu0 %v1126_v2 }
  0x79   : > { %737 = vmatpush.bf16.msrb.mxu1 %v1190_v5  ;;  %897 = vmatpush.bf16.msrb.mxu3 %v1366_v26 }
  0x7a   : > { %885 = vmatpush.bf16.msrb.mxu2 %v1357_v43 }
  0x7c   : > { %725 = vmatpush.bf16.msrb.mxu0 %v1118_v14 }
  0x7d   : > { %738 = vmatpush.bf16.msrb.mxu1 %v1182_v17  ;;  %898 = vmatpush.bf16.msrb.mxu3 %v1365_v28 }
  0x7e   : > { %886 = vmatpush.bf16.msrb.mxu2 %v1356_v45 }
  0x81   : > { %899 = vmatpush.bf16.msrb.mxu3 %v1364_v42 }
  0x82   : > { %887 = vmatpush.bf16.msrb.mxu2 %v1355_v46 }
  0x85   : > { %900 = vmatpush.bf16.msrb.mxu3 %v1363_v44 }
  0xdc   : > { %v473_v31 = vpop.f32.mrf.mxu0 }
  0xdd   : > { %v474_v32 = vadd.f32 %v473_v31, %v380_v29  ;;  %v486_v33 = vpop.f32.mrf.mxu1 }
  0xde   : > { %v487_v34 = vadd.f32 %v486_v33, %v381_v30 }
  0xdf   : > { %v490_v35 = vmax.f32 %v474_v32, 0.0 }
  0xe0   : > { %v491_v36 = vmax.f32 %v487_v34, 0.0 }
  0xe1   : > { %v492_v37 = vpack.c.bf16 %v490_v35, %v490_v35 }
  0xe2   : > { %v493_v38 = vpack.c.bf16 %v491_v36, %v491_v36 }
  0xe3   : > { %700 = vmatmul.bf16.vlgmr.msra.gmra.mxu2 %v492_v37  ;;  %726 = vmatmul.bf16.vlgmr.msrb.gmra.mxu0 %v492_v37 }
  0xe4   : > { %713 = vmatmul.bf16.vlgmr.msra.gmra.mxu3 %v493_v38  ;;  %739 = vmatmul.bf16.vlgmr.msrb.gmra.mxu1 %v493_v38  ;;  %v475_v39 = vpop.f32.mrf.mxu0 }
  0xe5   : > { %v488_v40 = vpop.f32.mrf.mxu1 }
 0x160   : > { %v727_v49 = vpop.f32.mrf.mxu0 }
 0x161   : > { %v728_v50 = vadd.f32 %v727_v49, %v529_v48  ;;  %v740_v51 = vpop.f32.mrf.mxu1 }
 0x163   : > { %v741_v52 = vadd.f32 %v740_v51, %v728_v50 }
 0x165   : > { %v745_v54 = vmax.f32 %v741_v52, 0.0 }
 0x166   : > { %v701_v55 = vpop.f32.mrf.mxu2 }
 0x167   : > { %v747_v56 = vpack.c.bf16 %v745_v54, %v745_v54  ;;  %v702_v57 = vadd.f32 %v701_v55, %v528_v53  ;;  %v714_v58 = vpop.f32.mrf.mxu3 }
 0x168   : > { %v729_v59 = vpop.f32.mrf.mxu0 }
 0x169   : > { %v715_v60 = vadd.f32 %v714_v58, %v702_v57  ;;  %v742_v61 = vpop.f32.mrf.mxu1  ;;  %901 = vmatmul.bf16.vlgmr.msrb.gmra.mxu3 %v747_v56 }
 0x16b   : > { %v744_v62 = vmax.f32 %v715_v60, 0.0 }
 0x16d   : > { %v746_v63 = vpack.c.bf16 %v744_v62, %v744_v62 }
 0x16e   : > { %v703_v0 = vpop.f32.mrf.mxu2 }
 0x16f   : > { %v716_v1 = vpop.f32.mrf.mxu3  ;;  %888 = vmatmul.bf16.vlgmr.msrb.gmra.mxu2 %v746_v63 }
 0x1ec   : > { %v902_v2 = vpop.f32.mrf.mxu3 }
 0x1f2   : > { %v889_v4 = vpop.f32.mrf.mxu2 }
 0x1f3   : > { %v890_v5 = vadd.f32 %v1462_v3, %v889_v4 }
 0x1f4   : > { %v904_v6 = vpop.f32.mrf.mxu3 }
 0x1f5   : > { %v903_v7 = vadd.f32 %v902_v2, %v890_v5 }
 0x1f7   : > { %906 = vst [vmem:[%s359_s10] sm:$0xff] %v903_v7 }
 0x1f8   : > { %1640 = shalt.err (!%p1637_p9)
}
 0x1f9   : > { %1389 = dma.vmem_to_hbm [thread:$0]  (%p1824_p4), %s921_s12, 128, %s923_s30, %s908_s8  }
 0x1fa   : > { %v891_v8 = vpop.f32.mrf.mxu2 }
 0x1fb PF: > { %s934_s22 = sand.u32 1, %s1675_s24   ;;  %p1936_p10 = scmp.ge.s32.totalorder %s1687_s27, 2 }
 0x1fc   : > { %s935_s14 = scalar_lea.sflag [#allocation4], %s934_s22 }
 0x1fd   : > { %p1409_p13 = pnand %p1936_p10, %p1828_p6 }
 0x1ff   : > { %p1410_p11 = pneg %p1409_p13 }
 0x201   : > { %1670 = dma.done.wait (%p1410_p11), %s935_s14, 128  }
 0x202   : > { %1672 = vsyncadd (%p1410_p11), %s935_s14, 4294967168  ;;  %p22_p0 = scmp.ge.s32.totalorder %s1798_s17, 4   ;;  %s1937_s24 = smov %s1679_s25 }
 0x203   : > { %s1938_s25 = smov %s1683_s26  ;;  %s1939_s26 = smov %s1809_s18 }
 0x204   : > { %s1940_s27 = smov %s1798_s17  ;;  %24 = sbr.rel (!%p22_p0) target bundleno = 10 (0xa), region = 109 }
 0x209   :  { %941 = vsyncpa [#allocation3], 1 }
 0x20a   :  { %943 = vsyncpa [#allocation3 + $0x1], 1 }
 0x20b   :  { %944 = vsyncpa [#allocation6], 1 }
 0x20c   :  { %945 = vsyncpa [#allocation9], 1 }
 0x20d   :  { %946 = vsyncpa [#allocation4], 1 }
 0x20e   :  { %948 = vsyncpa [#allocation4 + $0x1], 1 }

</bundles_post_ra>
